<compile_context>
chip_gen: v7x
topology: tpu7x:2x2x1
jax: 0.10.0
libtpu: 0.0.40
codegen_flags: <defaults>
</compile_context>

<pallas_src>
import functools

import jax
import jax.numpy as jnp
from jax import lax
from jax.experimental import pallas as pl
from jax.experimental.pallas import tpu as pltpu


def _mlp_kernel(x_ref, w1_ref, b1_ref, w2t_ref, b2_ref, o_ref):
    # fc1: (TB, Din) @ (Din, H) on the MXU.  x tile cast to bf16 in-register
    # (w1 is pre-cast), f32 accumulation.
    h = jnp.dot(x_ref[...].astype(jnp.bfloat16), w1_ref[...],
                preferred_element_type=jnp.float32)          # (TB, H) f32
    h = jnp.maximum(h + b1_ref[...], 0.0)                    # ReLU
    # fc2 (single output feature): contract H with the MXU, producing a
    # lane-dense (1, TB) row -> unmasked stores, no (TB, 1) vreg waste.
    score = lax.dot_general(
        w2t_ref[...], h,
        dimension_numbers=(((1,), (1,)), ((), ())),
        preferred_element_type=jnp.float32)                   # (1, TB) f32
    o_ref[...] = (score + b2_ref[0]).astype(o_ref.dtype)


def _round_up(v, m):
    return ((v + m - 1) // m) * m


def prepare_params(w1, b1, w2, b2):
    """One-time weight layout / cast work, hoisted out of the jitted forward."""
    w1_bf16 = w1.astype(jnp.bfloat16)                 # (Din, H) MXU input dtype
    b1_2d = b1.reshape(1, -1).astype(jnp.float32)     # (1, H)
    w2t = w2.reshape(1, -1).astype(jnp.float32)       # (1, H) pre-transposed
    b2_1d = b2.reshape(1).astype(jnp.float32)         # scalar -> SMEM
    return w1_bf16, b1_2d, w2t, b2_1d


@functools.partial(jax.jit, static_argnames=("block_b",))
def linear_network_forward(x, w1_bf16, b1_2d, w2t, b2_1d, *, block_b=1024):
    """x: (B, Din) f32; prepared params from prepare_params().
    Returns (B, 1) f32 -- same semantics as PyTorch LinearNetwork.forward."""
    B, Din = x.shape
    H = w1_bf16.shape[1]

    # Batch tile: sublane multiple, adapted to B; no HBM pad of x.
    TB = min(block_b, _round_up(B, 8))
    num_tiles = pl.cdiv(B, TB)
    # Ensure >= 2 grid steps for moderate/large batches so the "parallel" axis
    # can shard across both TensorCores on v7x.
    if num_tiles < 2 and B >= 16:
        TB = _round_up(pl.cdiv(B, 2), 8)
        num_tiles = pl.cdiv(B, TB)

    # VMEM budget: double-buffered f32 x tiles + in-kernel bf16 copy + w1 +
    # h / accumulator temporaries + lane-dense output.  Clamp within every
    # generation's physical VMEM (v7x = 64 MiB).
    est = (2 * TB * Din * 4      # x tiles (f32, double-buffered)
           + TB * Din * 2        # bf16 cast of x inside kernel
           + 2 * Din * H * 2     # w1 (bf16, conservatively x2)
           + 3 * TB * H * 4      # h + matmul temporaries (f32)
           + 4 * TB * 4          # (1, TB) output (double-buffered, slack)
           + 8 * H * 4)          # b1 / w2t
    vmem_limit = int(min(max(est * 3 // 2, 16 << 20), 56 << 20))

    out = pl.pallas_call(
        _mlp_kernel,
        out_shape=jax.ShapeDtypeStruct((num_tiles, TB), x.dtype),
        grid_spec=pltpu.PrefetchScalarGridSpec(
            num_scalar_prefetch=0,
            grid=(num_tiles,),
            in_specs=[
                pl.BlockSpec((TB, Din), lambda i: (i, 0)),   # x tile, pipelined
                pl.BlockSpec((Din, H), lambda i: (0, 0)),    # w1 resident
                pl.BlockSpec((1, H), lambda i: (0, 0)),      # b1 resident
                pl.BlockSpec((1, H), lambda i: (0, 0)),      # w2^T resident
                pl.BlockSpec(memory_space=pltpu.MemorySpace.SMEM),  # b2 scalar
            ],
            out_specs=pl.BlockSpec((1, TB), lambda i: (i, 0)),  # lane-dense
        ),
        compiler_params=pltpu.CompilerParams(
            dimension_semantics=("parallel",),
            vmem_limit_bytes=vmem_limit),
    )(x, w1_bf16, b1_2d, w2t, b2_1d)

    # Rows beyond B in the last (partial) tile are garbage -> slice them away.
    return out.reshape(-1)[:B].reshape(B, 1)


def init_params(key, input_dim=960, hidden_dim=256, dtype=jnp.float32):
    """Deterministic init matching nn.Linear shapes (weights pre-transposed)."""
    k1, k2, k3, k4 = jax.random.split(key, 4)
    # PyTorch nn.Linear default: U(-1/sqrt(fan_in), 1/sqrt(fan_in))
    lim1 = 1.0 / (input_dim ** 0.5)
    lim2 = 1.0 / (hidden_dim ** 0.5)
    w1 = jax.random.uniform(k1, (input_dim, hidden_dim), dtype, -lim1, lim1)
    b1 = jax.random.uniform(k2, (hidden_dim,), dtype, -lim1, lim1)
    w2 = jax.random.uniform(k3, (hidden_dim, 1), dtype, -lim2, lim2)
    b2 = jax.random.uniform(k4, (1,), dtype, -lim2, lim2)
    return w1, b1, w2, b2


if __name__ == "__main__":
    key = jax.random.PRNGKey(0)
    kx, kp = jax.random.split(key)

    batch, input_dim, hidden_dim = 8, 960, 256
    x = jax.random.normal(kx, (batch, input_dim), jnp.float32)
    w1, b1, w2, b2 = init_params(kp, input_dim, hidden_dim)
    params = prepare_params(w1, b1, w2, b2)

    out = linear_network_forward(x, *params)
    out = jax.block_until_ready(out)

    # Cross-check against plain f32 JAX reference (bf16 MXU inputs -> ~1e-2).
    ref = jnp.maximum(x @ w1 + b1, 0.0) @ w2 + b2
    assert out.shape == (batch, 1)
    assert jnp.allclose(out, ref, atol=2e-2, rtol=2e-2), float(
        jnp.max(jnp.abs(out - ref)))

    # Exercise the partial-last-block / multi-tile path with an awkward batch.
    x2 = jax.random.normal(jax.random.PRNGKey(1), (19, input_dim), jnp.float32)
    out2 = jax.block_until_ready(
        linear_network_forward(x2, *params, block_b=8))
    ref2 = jnp.maximum(x2 @ w1 + b1, 0.0) @ w2 + b2
    assert out2.shape == (19, 1)
    assert jnp.allclose(out2, ref2, atol=2e-2, rtol=2e-2), float(
        jnp.max(jnp.abs(out2 - ref2)))

    print("KERNEL_OK")
</pallas_src>

<mosaic_0001>
module attributes {stable_mosaic.version = 11 : i64} {
  func.func @_mlp_kernel(%arg0: i32, %arg1: memref<8x960xf32, #tpu.memory_space<vmem>>, %arg2: memref<960x256xbf16, #tpu.memory_space<vmem>>, %arg3: memref<1x256xf32, #tpu.memory_space<vmem>>, %arg4: memref<1x256xf32, #tpu.memory_space<vmem>>, %arg5: memref<1xf32, #tpu.memory_space<smem>>, %arg6: memref<1x8xf32, #tpu.memory_space<vmem>>) attributes {dimension_semantics = [#tpu.dimension_semantics<parallel>], iteration_bounds = array<i64: 1>, scalar_prefetch = 0 : i64, scratch_operands = 0 : i64, tpu.core_type = #tpu.core_type<tc>, window_params = [{transform_indices = @transform_0, window_bounds = array<i64: 8, 960>}, {pipeline_mode = #tpu.pipeline_mode<synchronous>, transform_indices = @transform_1, window_bounds = array<i64: 960, 256>}, {pipeline_mode = #tpu.pipeline_mode<synchronous>, transform_indices = @transform_2, window_bounds = array<i64: 1, 256>}, {pipeline_mode = #tpu.pipeline_mode<synchronous>, transform_indices = @transform_3, window_bounds = array<i64: 1, 256>}, {transform_indices = @transform_4, window_bounds = array<i64: 1>}, {transform_indices = @transform_5, window_bounds = array<i64: 1, 8>}]} {
    %c0 = arith.constant 0 : index
    %c0_0 = arith.constant 0 : index
    %0 = vector.load %arg1[%c0, %c0_0] : memref<8x960xf32, #tpu.memory_space<vmem>>, vector<8x960xf32>
    %1 = arith.truncf %0 : vector<8x960xf32> to vector<8x960xbf16>
    %c0_1 = arith.constant 0 : index
    %c0_2 = arith.constant 0 : index
    %2 = vector.load %arg2[%c0_1, %c0_2] : memref<960x256xbf16, #tpu.memory_space<vmem>>, vector<960x256xbf16>
    %cst = arith.constant dense<0.000000e+00> : vector<8x256xf32>
    %3 = tpu.matmul %1, %2, %cst {dimension_numbers = #tpu.dot_dimension_numbers<[1], [0], [0], [1], [0, 0, 1, 1], [], []>} : vector<8x960xbf16>, vector<960x256xbf16>, vector<8x256xf32> -> vector<8x256xf32>
    %c0_3 = arith.constant 0 : index
    %c0_4 = arith.constant 0 : index
    %4 = vector.load %arg3[%c0_3, %c0_4] : memref<1x256xf32, #tpu.memory_space<vmem>>, vector<1x256xf32>
    %5 = vector.broadcast %4 : vector<1x256xf32> to vector<8x256xf32>
    %6 = arith.addf %3, %5 : vector<8x256xf32>
    %cst_5 = arith.constant 0.000000e+00 : f32
    %7 = vector.broadcast %cst_5 : f32 to vector<8x256xf32>
    %8 = arith.maximumf %6, %7 : vector<8x256xf32>
    %c0_6 = arith.constant 0 : index
    %c0_7 = arith.constant 0 : index
    %9 = vector.load %arg4[%c0_6, %c0_7] : memref<1x256xf32, #tpu.memory_space<vmem>>, vector<1x256xf32>
    %cst_8 = arith.constant dense<0.000000e+00> : vector<1x8xf32>
    %10 = tpu.matmul %9, %8, %cst_8 {dimension_numbers = #tpu.dot_dimension_numbers<[1], [1], [0], [0], [0, 0, 1, 0], [], []>} : vector<1x256xf32>, vector<8x256xf32>, vector<1x8xf32> -> vector<1x8xf32>
    %c0_9 = arith.constant 0 : index
    %11 = memref.load %arg5[%c0_9] : memref<1xf32, #tpu.memory_space<smem>>
    %12 = vector.broadcast %11 : f32 to vector<1x8xf32>
    %13 = arith.addf %10, %12 : vector<1x8xf32>
    %c0_10 = arith.constant 0 : index
    %c0_11 = arith.constant 0 : index
    %14 = vector.load %arg6[%c0_10, %c0_11] : memref<1x8xf32, #tpu.memory_space<vmem>>, vector<1x8xf32>
    tpu.vector_store %arg6[%c0_10, %c0_11], %13 {strides = array<i32>} : memref<1x8xf32, #tpu.memory_space<vmem>>, vector<1x8xf32>,
    return
  }
  func.func @transform_0(%arg0: i32) -> (i32, i32) {
    %c0_i32 = arith.constant 0 : i32
    %c0_i32_0 = arith.constant 0 : i32
    return %arg0, %c0_i32 : i32, i32
  }
  func.func @transform_1(%arg0: i32) -> (i32, i32) {
    %c0_i32 = arith.constant 0 : i32
    %c0_i32_0 = arith.constant 0 : i32
    %c0_i32_1 = arith.constant 0 : i32
    return %c0_i32, %c0_i32_0 : i32, i32
  }
  func.func @transform_2(%arg0: i32) -> (i32, i32) {
    %c0_i32 = arith.constant 0 : i32
    %c0_i32_0 = arith.constant 0 : i32
    %c0_i32_1 = arith.constant 0 : i32
    return %c0_i32, %c0_i32_0 : i32, i32
  }
  func.func @transform_3(%arg0: i32) -> (i32, i32) {
    %c0_i32 = arith.constant 0 : i32
    %c0_i32_0 = arith.constant 0 : i32
    %c0_i32_1 = arith.constant 0 : i32
    return %c0_i32, %c0_i32_0 : i32, i32
  }
  func.func @transform_4(%arg0: i32) -> i32 {
    %c0_i32 = arith.constant 0 : i32
    %c0_i32_0 = arith.constant 0 : i32
    return %c0_i32 : i32
  }
  func.func @transform_5(%arg0: i32) -> (i32, i32) {
    %c0_i32 = arith.constant 0 : i32
    %c0_i32_0 = arith.constant 0 : i32
    return %arg0, %c0_i32 : i32, i32
  }
}

</mosaic_0001>

<bundles_post_ra>
// kernel: linear_network_forward.1
= control target key start
LH: loop header
LB: loop body
LE: loop exit
PB: predicated region body
PF: predicated region fallthrough
CT: control target
= control target key end

     0   :  { %11 = vsyncpa [#allocation4], 0  ;;  %s1544_s0 = inlined_call_operand.hbm [shape: f32[8,960], index: 0, kind: input, shape index: {}]   ;;  %s1545_s1 = inlined_call_operand.hbm [shape: bf16[960,256], index: 1, kind: input, shape index: {}]   ;;  %s1546_s2 = inlined_call_operand.vmem [shape: f32[1,256], index: 2, kind: input, shape index: {}]   ;;  %s1547_s3 = inlined_call_operand.vmem [shape: f32[1,256], index: 3, kind: input, shape index: {}]   ;;  %s1548_s4 = inlined_call_operand.<no memory space> [shape: f32[1], index: 4, kind: input, shape index: {}]   ;;  %s1549_s5 = inlined_call_operand.hbm [shape: f32[1,8], index: 5, kind: output, shape index: {}]  }
   0x1   :  { %12 = vsyncpa [#allocation7], 0 }
   0x2   :  { %13 = vsyncpa [#allocation5], 0  ;;  %s1457_s18 = smov [#allocation3]   ;;  %s1458_s20 = smov [#allocation6]  }
   0x3   :  { %s20_s19 = sshll.u32 %s1457_s18, 4  ;;  %s29_s21 = sshll.u32 %s1458_s20, 4  ;;  %s21_s19 = int_to_ptr.vmem [resolvable:$true] %s20_s19  ;;  %s1492_s21 = int_to_ptr.vmem [resolvable:$true] %s29_s21 }
   0x4   :  { %s1385_s24 = scalar_lea.hbm %s1544_s0, 1024 }
   0x5   :  { %p1386_p0 = scmp.ne.s32.totalorder %s1544_s0, %s1385_s24  ;;  %p1389_p1 = scmp.lt.u32.totalorder %s1385_s24, %s1544_s0 }
   0x7   :  { %p1391_p2 = pnand %p1389_p1, %p1386_p0 }
   0x9   :  { %1394 = shalt.err (!%p1391_p2)
}
   0xa   :  { %s1395_s29 = scalar_lea.vmem %s21_s19, 1024  ;;  %p1400_p4 = scmp.lt.s32.totalorder %s21_s19, %s21_s19 }
   0xb   :  { %p1396_p3 = scmp.ne.s32.totalorder %s21_s19, %s1395_s29  ;;  %p1401_p5 = scmp.lt.s32.totalorder %s1395_s29, %s1395_s29 }
   0xd   :  { %p1402_p6 = por %p1401_p5, %p1400_p4 }
   0xf   :  { %p1403_p7 = pnand %p1402_p6, %p1396_p3 }
  0x11   :  { %1406 = shalt.err (!%p1403_p7)
}
  0x12   :  { %23 = dma.hbm_to_vmem [thread:$0]  %s1544_s0, 1024, %s21_s19, [#allocation4]  }
  0x13   :  { %s1407_s9 = scalar_lea.hbm %s1545_s1, 15360 }
  0x14   :  { %p1408_p8 = scmp.ne.s32.totalorder %s1545_s1, %s1407_s9  ;;  %p1411_p9 = scmp.lt.u32.totalorder %s1407_s9, %s1545_s1 }
  0x16   :  { %p1413_p10 = pnand %p1411_p9, %p1408_p8 }
  0x18   :  { %1416 = shalt.err (!%p1413_p10)
}
  0x19   :  { %s1417_s14 = scalar_lea.vmem %s1492_s21, 15360  ;;  %p1422_p12 = scmp.lt.s32.totalorder %s1492_s21, %s1492_s21 }
  0x1a   :  { %p1418_p11 = scmp.ne.s32.totalorder %s1492_s21, %s1417_s14  ;;  %p1423_p13 = scmp.lt.s32.totalorder %s1417_s14, %s1417_s14 }
  0x1c   :  { %p1424_p0 = por %p1423_p13, %p1422_p12 }
  0x1e   :  { %p1425_p1 = pnand %p1424_p0, %p1418_p11 }
  0x20   :  { %1428 = shalt.err (!%p1425_p1)
}
  0x21   :  { %s1459_s0 = smov 128   ;;  %s1460_s15 = smov 8  }
  0x22   :  { %35 = dma.hbm_to_vmem [thread:$0]  %s1545_s1, 15360, %s1492_s21, [#allocation7], %s1459_s0, %s1459_s0, %s1460_s15  }
  0x23   :  { %1451 = dma.done.wait [#allocation4], 1024  }
  0x24   :  { %1452 = vsyncadd [#allocation4], 4294966272 }
  0x25   :  { %1453 = dma.done.wait [#allocation7], 15360  }
  0x26   :  { %1454 = vsyncadd [#allocation7], 4294951936  ;;  %v1205_v0 = vld [vmem:[#allocation6 + $0x104] ss:$8 sps:$4 sm:$0xff]   ;;  %v1207_v1 = vld [vmem:[#allocation6 + $0x100] ss:$8 sps:$4 sm:$0xff]  }
  0x27   :  { %842 = vmatprep.subr.bf16.mxu0 %v1205_v0  ;;  %v1208_v2 = vld [vmem:[#allocation6 + $0x114] ss:$8 sps:$4 sm:$0xff]   ;;  %v1210_v3 = vld [vmem:[#allocation6 + $0x110] ss:$8 sps:$4 sm:$0xff]   ;;  %v1211_v4 = vld [vmem:[#allocation6 + $0x124] ss:$8 sps:$4 sm:$0xff]  }
  0x28   :  { %843 = vmatpush1.bf16.msra.mxu0 %v1207_v1  ;;  %v1217_v5 = vld [vmem:[#allocation6 + $0x4] ss:$8 sps:$4 sm:$0xff]   ;;  %v1219_v6 = vld [vmem:[#allocation6] ss:$8 sps:$4 sm:$0xff]   ;;  %v1214_v8 = vld [vmem:[#allocation6 + $0x134] ss:$8 sps:$4 sm:$0xff]  }
  0x29   :  { %844 = vmatprep.subr.bf16.mxu0 %v1208_v2  ;;  %v1213_v7 = vld [vmem:[#allocation6 + $0x120] ss:$8 sps:$4 sm:$0xff]   ;;  %801 = vmatprep.subr.bf16.mxu1 %v1217_v5  ;;  %v1223_v9 = vld [vmem:[#allocation6 + $0x14] ss:$8 sps:$4 sm:$0xff]   ;;  %v1225_v10 = vld [vmem:[#allocation6 + $0x10] ss:$8 sps:$4 sm:$0xff]  }
  0x2a   :  { %802 = vmatpush1.bf16.msra.mxu1 %v1219_v6  ;;  %v1216_v11 = vld [vmem:[#allocation6 + $0x130] ss:$8 sps:$4 sm:$0xff]   ;;  %v1229_v12 = vld [vmem:[#allocation6 + $0x24] ss:$8 sps:$4 sm:$0xff]   ;;  %v1231_v14 = vld [vmem:[#allocation6 + $0x20] ss:$8 sps:$4 sm:$0xff]  }
  0x2b   :  { %803 = vmatprep.subr.bf16.mxu1 %v1223_v9  ;;  %v1220_v13 = vld [vmem:[#allocation6 + $0x144] ss:$8 sps:$4 sm:$0xff]   ;;  %v1235_v15 = vld [vmem:[#allocation6 + $0x34] ss:$8 sps:$4 sm:$0xff]   ;;  %v1222_v16 = vld [vmem:[#allocation6 + $0x140] ss:$8 sps:$4 sm:$0xff]  }
  0x2c   :  { %845 = vmatpush1.bf16.msra.mxu0 %v1210_v3  ;;  %v1226_v17 = vld [vmem:[#allocation6 + $0x154] ss:$8 sps:$4 sm:$0xff]   ;;  %v1237_v18 = vld [vmem:[#allocation6 + $0x30] ss:$8 sps:$4 sm:$0xff]   ;;  %v1241_v19 = vld [vmem:[#allocation6 + $0x44] ss:$8 sps:$4 sm:$0xff]  }
  0x2d   :  { %846 = vmatprep.subr.bf16.mxu0 %v1211_v4  ;;  %v1228_v20 = vld [vmem:[#allocation6 + $0x150] ss:$8 sps:$4 sm:$0xff]   ;;  %v1232_v21 = vld [vmem:[#allocation6 + $0x164] ss:$8 sps:$4 sm:$0xff]   ;;  %v1243_v22 = vld [vmem:[#allocation6 + $0x40] ss:$8 sps:$4 sm:$0xff]  }
  0x2e   :  { %804 = vmatpush1.bf16.msra.mxu1 %v1225_v10  ;;  %v1247_v23 = vld [vmem:[#allocation6 + $0x54] ss:$8 sps:$4 sm:$0xff]   ;;  %v1234_v24 = vld [vmem:[#allocation6 + $0x160] ss:$8 sps:$4 sm:$0xff]   ;;  %v1249_v26 = vld [vmem:[#allocation6 + $0x50] ss:$8 sps:$4 sm:$0xff]  }
  0x2f   :  { %805 = vmatprep.subr.bf16.mxu1 %v1229_v12  ;;  %v1238_v25 = vld [vmem:[#allocation6 + $0x174] ss:$8 sps:$4 sm:$0xff]   ;;  %v1253_v27 = vld [vmem:[#allocation6 + $0x64] ss:$8 sps:$4 sm:$0xff]   ;;  %v1240_v28 = vld [vmem:[#allocation6 + $0x170] ss:$8 sps:$4 sm:$0xff]  }
  0x30   :  { %847 = vmatpush1.bf16.msra.mxu0 %v1213_v7  ;;  %v1244_v29 = vld [vmem:[#allocation6 + $0x184] ss:$8 sps:$4 sm:$0xff]   ;;  %v1255_v30 = vld [vmem:[#allocation6 + $0x60] ss:$8 sps:$4 sm:$0xff]   ;;  %v1259_v31 = vld [vmem:[#allocation6 + $0x74] ss:$8 sps:$4 sm:$0xff]  }
  0x31   :  { %848 = vmatprep.subr.bf16.mxu0 %v1214_v8  ;;  %v1246_v32 = vld [vmem:[#allocation6 + $0x180] ss:$8 sps:$4 sm:$0xff]   ;;  %v1250_v33 = vld [vmem:[#allocation6 + $0x194] ss:$8 sps:$4 sm:$0xff]   ;;  %v1261_v34 = vld [vmem:[#allocation6 + $0x70] ss:$8 sps:$4 sm:$0xff]  }
  0x32   :  { %806 = vmatpush1.bf16.msra.mxu1 %v1231_v14  ;;  %v1265_v35 = vld [vmem:[#allocation6 + $0x84] ss:$8 sps:$4 sm:$0xff]   ;;  %v1252_v36 = vld [vmem:[#allocation6 + $0x190] ss:$8 sps:$4 sm:$0xff]   ;;  %v1267_v38 = vld [vmem:[#allocation6 + $0x80] ss:$8 sps:$4 sm:$0xff]  }
  0x33   :  { %807 = vmatprep.subr.bf16.mxu1 %v1235_v15  ;;  %v1256_v37 = vld [vmem:[#allocation6 + $0x1a4] ss:$8 sps:$4 sm:$0xff]   ;;  %v1271_v39 = vld [vmem:[#allocation6 + $0x94] ss:$8 sps:$4 sm:$0xff]   ;;  %v1258_v41 = vld [vmem:[#allocation6 + $0x1a0] ss:$8 sps:$4 sm:$0xff]  }
  0x34   :  { %849 = vmatpush1.bf16.msra.mxu0 %v1216_v11  ;;  %v52_v40 = vld [vmem:[#allocation3 + $0x18] sm:$0xff]  ;;  %v1277_v45 = vld [vmem:[#allocation6 + $0xa4] ss:$8 sps:$4 sm:$0xff]   ;;  %v1279_v48 = vld [vmem:[#allocation6 + $0xa0] ss:$8 sps:$4 sm:$0xff]   ;;  %vm797_vm0 = vcmask 523264  }
  0x35   :  { %850 = vmatprep.subr.bf16.mxu0 %v1220_v13  ;;  %v60_v42 = vpack.c.bf16 %v52_v40, %v52_v40  ;;  %v1262_v43 = vld [vmem:[#allocation6 + $0x1b4] ss:$8 sps:$4 sm:$0xff]   ;;  %v1273_v44 = vld [vmem:[#allocation6 + $0x90] ss:$8 sps:$4 sm:$0xff]   ;;  %v1268_v47 = vld [vmem:[#allocation6 + $0x1c4] ss:$8 sps:$4 sm:$0xff]  }
  0x36   :  { %808 = vmatpush1.bf16.msra.mxu1 %v1237_v18  ;;  %v1264_v46 = vld [vmem:[#allocation6 + $0x1b0] ss:$8 sps:$4 sm:$0xff]   ;;  %v1283_v49 = vld [vmem:[#allocation6 + $0xb4] ss:$8 sps:$4 sm:$0xff]   ;;  %v1270_v50 = vld [vmem:[#allocation6 + $0x1c0] ss:$8 sps:$4 sm:$0xff]  }
  0x37   :  { %809 = vmatprep.subr.bf16.mxu1 %v1241_v19  ;;  %874 = vmatprep.mubr.bf16.mxu0 %v60_v42  ;;  %v1274_v51 = vld [vmem:[#allocation6 + $0x1d4] ss:$8 sps:$4 sm:$0xff]   ;;  %v50_v52 = vld [vmem:[#allocation3 + $0x8] sm:$0xff]  ;;  %v1285_v53 = vld [vmem:[#allocation6 + $0xb0] ss:$8 sps:$4 sm:$0xff]   ;;  %s1461_s21 = smov [#allocation8]  }
  0x38   :  { %851 = vmatpush1.bf16.msra.mxu0 %v1222_v16  ;;  %v58_v54 = vpack.c.bf16 %v50_v52, %v50_v52  ;;  %v1289_v55 = vld [vmem:[#allocation6 + $0xc4] ss:$8 sps:$4 sm:$0xff]   ;;  %v1276_v56 = vld [vmem:[#allocation6 + $0x1d0] ss:$8 sps:$4 sm:$0xff]   ;;  %v1291_v58 = vld [vmem:[#allocation6 + $0xc0] ss:$8 sps:$4 sm:$0xff]  }
  0x39   :  { %852 = vmatprep.subr.bf16.mxu0 %v1226_v17  ;;  %v1280_v57 = vld [vmem:[#allocation6 + $0x1e4] ss:$8 sps:$4 sm:$0xff]   ;;  %v1295_v59 = vld [vmem:[#allocation6 + $0xd4] ss:$8 sps:$4 sm:$0xff]   ;;  %v1282_v60 = vld [vmem:[#allocation6 + $0x1e0] ss:$8 sps:$4 sm:$0xff]  }
  0x3a   :  { %810 = vmatpush1.bf16.msra.mxu1 %v1243_v22  ;;  %833 = vmatprep.mubr.bf16.mxu1 %v58_v54  ;;  %v1286_v61 = vld [vmem:[#allocation6 + $0x1f4] ss:$8 sps:$4 sm:$0xff]   ;;  %v1297_v62 = vld [vmem:[#allocation6 + $0xd0] ss:$8 sps:$4 sm:$0xff]   ;;  %v1301_v63 = vld [vmem:[#allocation6 + $0xe4] ss:$8 sps:$4 sm:$0xff]  }
  0x3b   :  { %811 = vmatprep.subr.bf16.mxu1 %v1247_v23  ;;  %v1288_v0 = vld [vmem:[#allocation6 + $0x1f0] ss:$8 sps:$4 sm:$0xff]   ;;  %v1294_v2 = vld [vmem:[#allocation6 + $0x204] ss:$8 sps:$4 sm:$0xff]   ;;  %v1303_v3 = vld [vmem:[#allocation6 + $0xe0] ss:$8 sps:$4 sm:$0xff]  }
  0x3c   :  { %853 = vmatpush1.bf16.msra.mxu0 %v1228_v20  ;;  %v51_v1 = vld [vmem:[#allocation3 + $0x10] sm:$0xff]  ;;  %v1292_v6 = vld [vmem:[#allocation6 + $0x200] ss:$8 sps:$4 sm:$0xff]   ;;  %v1315_v10 = vld [vmem:[#allocation6 + $0x304] ss:$8 sps:$4 sm:$0xff]   ;;  %s1059_s22 = sshll.u32 %s1461_s21, 4  ;;  %s1060_s22 = int_to_ptr.vmem [resolvable:$true] %s1059_s22 }
  0x3d   :  { %854 = vmatprep.subr.bf16.mxu0 %v1232_v21  ;;  %v59_v4 = vpack.c.bf16 %v51_v1, %v51_v1  ;;  %v1307_v5 = vld [vmem:[#allocation6 + $0xf4] ss:$8 sps:$4 sm:$0xff]   ;;  %v1309_v8 = vld [vmem:[#allocation6 + $0xf0] ss:$8 sps:$4 sm:$0xff]   ;;  %v49_v9 = vld [vmem:[#allocation3] sm:$0xff]  ;;  %vm1051_vm1 = vcmask 57344   ;;  %p1434_p3 = scmp.lt.s32.totalorder %s1060_s22, %s1060_s22 }
  0x3e   :  { %812 = vmatpush1.bf16.msra.mxu1 %v1249_v26  ;;  %v1300_v7 = vld [vmem:[#allocation6 + $0x214] ss:$8 sps:$4 sm:$0xff]   ;;  %v1298_v11 = vld [vmem:[#allocation6 + $0x210] ss:$8 sps:$4 sm:$0xff]   ;;  %v1306_v12 = vld [vmem:[#allocation6 + $0x224] ss:$8 sps:$4 sm:$0xff]   ;;  %v57_v13 = vpack.c.bf16 %v49_v9, %v49_v9 }
  0x3f   :  { %813 = vmatprep.subr.bf16.mxu1 %v1253_v27  ;;  %v1313_v14 = vld [vmem:[#allocation6 + $0x300] ss:$8 sps:$4 sm:$0xff]   ;;  %v1321_v15 = vld [vmem:[#allocation6 + $0x314] ss:$8 sps:$4 sm:$0xff]   ;;  %v1319_v18 = vld [vmem:[#allocation6 + $0x310] ss:$8 sps:$4 sm:$0xff]  }
  0x40   :  { %855 = vmatpush1.bf16.msra.mxu0 %v1234_v24  ;;  %v1304_v16 = vld [vmem:[#allocation6 + $0x220] ss:$8 sps:$4 sm:$0xff]   ;;  %v1312_v17 = vld [vmem:[#allocation6 + $0x234] ss:$8 sps:$4 sm:$0xff]   ;;  %v1327_v19 = vld [vmem:[#allocation6 + $0x324] ss:$8 sps:$4 sm:$0xff]  }
  0x41   :  { %856 = vmatprep.subr.bf16.mxu0 %v1238_v25  ;;  %v1310_v20 = vld [vmem:[#allocation6 + $0x230] ss:$8 sps:$4 sm:$0xff]   ;;  %v1318_v21 = vld [vmem:[#allocation6 + $0x244] ss:$8 sps:$4 sm:$0xff]   ;;  %v1325_v22 = vld [vmem:[#allocation6 + $0x320] ss:$8 sps:$4 sm:$0xff]  }
  0x42   :  { %814 = vmatpush1.bf16.msra.mxu1 %v1255_v30  ;;  %v1333_v23 = vld [vmem:[#allocation6 + $0x334] ss:$8 sps:$4 sm:$0xff]   ;;  %v1316_v24 = vld [vmem:[#allocation6 + $0x240] ss:$8 sps:$4 sm:$0xff]   ;;  %v1331_v26 = vld [vmem:[#allocation6 + $0x330] ss:$8 sps:$4 sm:$0xff]  }
  0x43   :  { %815 = vmatprep.subr.bf16.mxu1 %v1259_v31  ;;  %v1324_v25 = vld [vmem:[#allocation6 + $0x254] ss:$8 sps:$4 sm:$0xff]   ;;  %v1334_v40 = vld [vmem:[#allocation6 + $0x270] ss:$8 sps:$4 sm:$0xff]   ;;  %v1349_v42 = vld [vmem:[#allocation6 + $0x360] ss:$8 sps:$4 sm:$0xff]  }
  0x44   :  { %857 = vmatpush1.bf16.msra.mxu0 %v1240_v28  ;;  %v56_v27 = vld [vmem:[#allocation3 + $0x38] sm:$0xff]  ;;  %v54_v28 = vld [vmem:[#allocation3 + $0x28] sm:$0xff]  ;;  %s1429_s23 = scalar_lea.vmem %s1060_s22, 16  ;;  %s1433_s24 = scalar_lea.vmem %s1060_s22, 32 }
  0x45   :  { %858 = vmatprep.subr.bf16.mxu0 %v1244_v29  ;;  %v1339_v29 = vld [vmem:[#allocation6 + $0x344] ss:$8 sps:$4 sm:$0xff]   ;;  %v64_v30 = vpack.c.bf16 %v56_v27, %v56_v27  ;;  %v62_v31 = vpack.c.bf16 %v54_v28, %v54_v28  ;;  %v1352_v52 = vld [vmem:[#allocation6 + $0x2a0] ss:$8 sps:$4 sm:$0xff]   ;;  %v1367_v54 = vld [vmem:[#allocation6 + $0x390] ss:$8 sps:$4 sm:$0xff]   ;;  %p1430_p2 = scmp.ne.s32.totalorder %s1060_s22, %s1429_s23  ;;  %p1435_p4 = scmp.lt.s32.totalorder %s1433_s24, %s1429_s23 }
  0x46   :  { %816 = vmatpush1.bf16.msra.mxu1 %v1261_v34  ;;  %v1337_v34 = vld [vmem:[#allocation6 + $0x340] ss:$8 sps:$4 sm:$0xff]   ;;  %v1378_v1 = vld [vmem:[#allocation6 + $0x2e4] ss:$8 sps:$4 sm:$0xff]  }
  0x47   :  { %817 = vmatprep.subr.bf16.mxu1 %v1265_v35  ;;  %v1345_v35 = vld [vmem:[#allocation6 + $0x354] ss:$8 sps:$4 sm:$0xff]   ;;  %p1436_p5 = por %p1435_p4, %p1434_p3 }
  0x48   :  { %859 = vmatpush1.bf16.msra.mxu0 %v1246_v32  ;;  %v1322_v32 = vld [vmem:[#allocation6 + $0x250] ss:$8 sps:$4 sm:$0xff]  }
  0x49   :  { %860 = vmatprep.subr.bf16.mxu0 %v1250_v33  ;;  %v1330_v33 = vld [vmem:[#allocation6 + $0x264] ss:$8 sps:$4 sm:$0xff]   ;;  %p1437_p6 = pnand %p1436_p5, %p1430_p2 }
  0x4a   :  { %818 = vmatpush1.bf16.msra.mxu1 %v1267_v38  ;;  %v1343_v38 = vld [vmem:[#allocation6 + $0x350] ss:$8 sps:$4 sm:$0xff]  }
  0x4b   :  { %819 = vmatprep.subr.bf16.mxu1 %v1271_v39  ;;  %v1351_v39 = vld [vmem:[#allocation6 + $0x364] ss:$8 sps:$4 sm:$0xff]  }
  0x4c   :  { %861 = vmatpush1.bf16.msra.mxu0 %v1252_v36  ;;  %v1328_v36 = vld [vmem:[#allocation6 + $0x260] ss:$8 sps:$4 sm:$0xff]  }
  0x4d   :  { %862 = vmatprep.subr.bf16.mxu0 %v1256_v37  ;;  %v1336_v37 = vld [vmem:[#allocation6 + $0x274] ss:$8 sps:$4 sm:$0xff]  }
  0x4e   :  { %820 = vmatpush1.bf16.msra.mxu1 %v1273_v44  ;;  %v1340_v44 = vld [vmem:[#allocation6 + $0x280] ss:$8 sps:$4 sm:$0xff]  }
  0x4f   :  { %821 = vmatprep.subr.bf16.mxu1 %v1277_v45  ;;  %v1348_v45 = vld [vmem:[#allocation6 + $0x294] ss:$8 sps:$4 sm:$0xff]  }
  0x50   :  { %863 = vmatpush1.bf16.msra.mxu0 %v1258_v41  ;;  %v1342_v41 = vld [vmem:[#allocation6 + $0x284] ss:$8 sps:$4 sm:$0xff]  }
  0x51   :  { %864 = vmatprep.subr.bf16.mxu0 %v1262_v43  ;;  %v1357_v43 = vld [vmem:[#allocation6 + $0x374] ss:$8 sps:$4 sm:$0xff]  }
  0x52   :  { %822 = vmatpush1.bf16.msra.mxu1 %v1279_v48  ;;  %v1346_v48 = vld [vmem:[#allocation6 + $0x290] ss:$8 sps:$4 sm:$0xff]  }
  0x53   :  { %823 = vmatprep.subr.bf16.mxu1 %v1283_v49  ;;  %v1354_v49 = vld [vmem:[#allocation6 + $0x2a4] ss:$8 sps:$4 sm:$0xff]  }
  0x54   :  { %865 = vmatpush1.bf16.msra.mxu0 %v1264_v46  ;;  %v1355_v46 = vld [vmem:[#allocation6 + $0x370] ss:$8 sps:$4 sm:$0xff]  }
  0x55   :  { %866 = vmatprep.subr.bf16.mxu0 %v1268_v47  ;;  %v1363_v47 = vld [vmem:[#allocation6 + $0x384] ss:$8 sps:$4 sm:$0xff]  }
  0x56   :  { %824 = vmatpush1.bf16.msra.mxu1 %v1285_v53  ;;  %v1360_v53 = vld [vmem:[#allocation6 + $0x2b4] ss:$8 sps:$4 sm:$0xff]  }
  0x57   :  { %825 = vmatprep.subr.bf16.mxu1 %v1289_v55  ;;  %v1375_v55 = vld [vmem:[#allocation6 + $0x3a4] ss:$8 sps:$4 sm:$0xff]  }
  0x58   :  { %867 = vmatpush1.bf16.msra.mxu0 %v1270_v50  ;;  %v1361_v50 = vld [vmem:[#allocation6 + $0x380] ss:$8 sps:$4 sm:$0xff]  }
  0x59   :  { %868 = vmatprep.subr.bf16.mxu0 %v1274_v51  ;;  %v1369_v51 = vld [vmem:[#allocation6 + $0x394] ss:$8 sps:$4 sm:$0xff]  }
  0x5a   :  { %826 = vmatpush1.bf16.msra.mxu1 %v1291_v58  ;;  %v1373_v58 = vld [vmem:[#allocation6 + $0x3a0] ss:$8 sps:$4 sm:$0xff]  }
  0x5b   :  { %827 = vmatprep.subr.bf16.mxu1 %v1295_v59  ;;  %v1381_v59 = vld [vmem:[#allocation6 + $0x3b4] ss:$8 sps:$4 sm:$0xff]  }
  0x5c   :  { %869 = vmatpush1.bf16.msra.mxu0 %v1276_v56  ;;  %v1358_v56 = vld [vmem:[#allocation6 + $0x2b0] ss:$8 sps:$4 sm:$0xff]  }
  0x5d   :  { %870 = vmatprep.subr.bf16.mxu0 %v1280_v57  ;;  %v1366_v57 = vld [vmem:[#allocation6 + $0x2c4] ss:$8 sps:$4 sm:$0xff]  }
  0x5e   :  { %828 = vmatpush1.bf16.msra.mxu1 %v1297_v62  ;;  %v1379_v62 = vld [vmem:[#allocation6 + $0x3b0] ss:$8 sps:$4 sm:$0xff]  }
  0x5f   :  { %829 = vmatprep.subr.bf16.mxu1 %v1301_v63  ;;  %v55_v63 = vld [vmem:[#allocation3 + $0x30] sm:$0xff] }
  0x60   :  { %871 = vmatpush1.bf16.msra.mxu0 %v1282_v60  ;;  %v1364_v60 = vld [vmem:[#allocation6 + $0x2c0] ss:$8 sps:$4 sm:$0xff]  }
  0x61   :  { %872 = vmatprep.subr.bf16.mxu0 %v1286_v61  ;;  %v1372_v61 = vld [vmem:[#allocation6 + $0x2d4] ss:$8 sps:$4 sm:$0xff]  }
  0x62   :  { %830 = vmatpush1.bf16.msra.mxu1 %v1303_v3  ;;  %v1376_v3 = vld [vmem:[#allocation6 + $0x2e0] ss:$8 sps:$4 sm:$0xff]  }
  0x63   :  { %831 = vmatprep.subr.bf16.mxu1 %v1307_v5  ;;  %v1382_v5 = vld [vmem:[#allocation6 + $0x2f0] ss:$8 sps:$4 sm:$0xff]  }
  0x64   :  { %873 = vmatpush1.bf16.msra.mxu0 %v1288_v0  ;;  %v1370_v0 = vld [vmem:[#allocation6 + $0x2d0] ss:$8 sps:$4 sm:$0xff]  }
  0x65   :  { %883 = vmatprep.subr.bf16.mxu0 %v1294_v2  ;;  %v63_v2 = vpack.c.bf16 %v55_v63, %v55_v63 }
  0x66   :  { %832 = vmatpush1.bf16.msra.mxu1 %v1309_v8  ;;  %v187_v8 = vlaneseq }
  0x67   :  { %875 = vmatmul.mubr.bf16.vlgmr.msra.gmra.mrb[0].mxu0 %v59_v4  ;;  %924 = vmatprep.subr.bf16.mxu1 %v1315_v10  ;;  %v1384_v4 = vld [vmem:[#allocation6 + $0x2f4] ss:$8 sps:$4 sm:$0xff]  }
  0x68   :  { %884 = vmatpush1.bf16.msra.mxu0 %v1292_v6  ;;  %915 = vmatprep.mubr.bf16.mxu0 %v62_v31  ;;  %v53_v6 = vld [vmem:[#allocation3 + $0x20] sm:$0xff]  ;;  %v188_v9 = vshrl.u32 %v187_v8, 7 }
  0x69   :  { %885 = vmatprep.subr.bf16.mxu0 %v1300_v7  ;;  %834 = vmatmul.mubr.bf16.vlgmr.msra.gmra.mrb[0].mxu1 %v57_v13  ;;  %v61_v7 = vpack.c.bf16 %v53_v6, %v53_v6  ;;  %v185_v13 = vld [vmem:[%s1546_s2] sm:$0x3] }
  0x6a   :  { %925 = vmatpush1.bf16.msra.mxu1 %v1313_v14  ;;  %1189 = vmatprep.mubr.msk.bf16.mxu1 %vm797_vm0, %v64_v30  ;;  %v193_v10 = vsub.s32 1, %v188_v9 }
  0x6b   :  { %926 = vmatprep.subr.bf16.mxu1 %v1321_v15 }
  0x6c   :  { %886 = vmatpush1.bf16.msra.mxu0 %v1298_v11  ;;  %v967_v11 = vld [vmem:[%s1547_s3] sm:$0x3]  ;;  %v194_v14 = vrot.slane %v185_v13, %v193_v10 }
  0x6d   :  { %887 = vmatprep.subr.bf16.mxu0 %v1306_v12  ;;  %v978_v12 = vrot.slane %v967_v11, %v193_v10 }
  0x6e   :  { %927 = vmatpush1.bf16.msra.mxu1 %v1319_v18 }
  0x6f   :  { %928 = vmatprep.subr.bf16.mxu1 %v1327_v19 }
  0x70   :  { %888 = vmatpush1.bf16.msra.mxu0 %v1304_v16 }
  0x71   :  { %889 = vmatprep.subr.bf16.mxu0 %v1312_v17 }
  0x72   :  { %929 = vmatpush1.bf16.msra.mxu1 %v1325_v22 }
  0x73   :  { %930 = vmatprep.subr.bf16.mxu1 %v1333_v23 }
  0x74   :  { %890 = vmatpush1.bf16.msra.mxu0 %v1310_v20 }
  0x75   :  { %891 = vmatprep.subr.bf16.mxu0 %v1318_v21  ;;  %v189_v21 = vsub.s32 0, %v188_v9 }
  0x76   :  { %931 = vmatpush1.bf16.msra.mxu1 %v1331_v26 }
  0x77   :  { %932 = vmatprep.subr.bf16.mxu1 %v1339_v29 }
  0x78   :  { %892 = vmatpush1.bf16.msra.mxu0 %v1316_v24 }
  0x79   :  { %893 = vmatprep.subr.bf16.mxu0 %v1324_v25  ;;  %v190_v25 = vrot.slane %v185_v13, %v189_v21 }
  0x7a   :  { %933 = vmatpush1.bf16.msra.mxu1 %v1337_v34 }
  0x7b   :  { %934 = vmatprep.subr.bf16.mxu1 %v1345_v35 }
  0x7c   :  { %894 = vmatpush1.bf16.msra.mxu0 %v1322_v32 }
  0x7d   :  { %895 = vmatprep.subr.bf16.mxu0 %v1330_v33 }
  0x7e   :  { %935 = vmatpush1.bf16.msra.mxu1 %v1343_v38  ;;  %v969_v38 = vstv %s1548_s4 }
  0x7f   :  { %936 = vmatprep.subr.bf16.mxu1 %v1351_v39 }
  0x80   :  { %896 = vmatpush1.bf16.msra.mxu0 %v1328_v36 }
  0x81   :  { %897 = vmatprep.subr.bf16.mxu0 %v1336_v37  ;;  %v974_v37 = vrot.slane %v967_v11, %v189_v21 }
  0x82   :  { %937 = vmatpush1.bf16.msra.mxu1 %v1349_v42 }
  0x83   :  { %938 = vmatprep.subr.bf16.mxu1 %v1357_v43 }
  0x84   :  { %898 = vmatpush1.bf16.msra.mxu0 %v1334_v40 }
  0x85   :  { %899 = vmatprep.subr.bf16.mxu0 %v1342_v41 }
  0x86   :  { %939 = vmatpush1.bf16.msra.mxu1 %v1355_v46 }
  0x87   :  { %940 = vmatprep.subr.bf16.mxu1 %v1363_v47 }
  0x88   :  { %900 = vmatpush1.bf16.msra.mxu0 %v1340_v44 }
  0x89   :  { %901 = vmatprep.subr.bf16.mxu0 %v1348_v45 }
  0x8a   :  { %941 = vmatpush1.bf16.msra.mxu1 %v1361_v50 }
  0x8b   :  { %942 = vmatprep.subr.bf16.mxu1 %v1369_v51 }
  0x8c   :  { %902 = vmatpush1.bf16.msra.mxu0 %v1346_v48 }
  0x8d   :  { %903 = vmatprep.subr.bf16.mxu0 %v1354_v49 }
  0x8e   :  { %943 = vmatpush1.bf16.msra.mxu1 %v1367_v54 }
  0x8f   :  { %944 = vmatprep.subr.bf16.mxu1 %v1375_v55 }
  0x90   :  { %904 = vmatpush1.bf16.msra.mxu0 %v1352_v52 }
  0x91   :  { %905 = vmatprep.subr.bf16.mxu0 %v1360_v53 }
  0x92   :  { %945 = vmatpush1.bf16.msra.mxu1 %v1373_v58 }
  0x93   :  { %946 = vmatprep.subr.bf16.mxu1 %v1381_v59 }
  0x94   :  { %906 = vmatpush1.bf16.msra.mxu0 %v1358_v56 }
  0x95   :  { %907 = vmatprep.subr.bf16.mxu0 %v1366_v57 }
  0x96   :  { %947 = vmatpush1.bf16.msra.mxu1 %v1379_v62 }
  0x98   :  { %908 = vmatpush1.bf16.msra.mxu0 %v1364_v60 }
  0x99   :  { %909 = vmatprep.subr.bf16.mxu0 %v1372_v61  ;;  %957 = vmatmul.mubr.bf16.vlgmr.msra.gmra.mrb[4].mxu1 %v63_v2 }
  0x9a   :  { %1045 = vmatprep.mubr.f32.mxu1 %v978_v12 }
  0x9c   :  { %910 = vmatpush1.bf16.msra.mxu0 %v1370_v0 }
  0x9d   :  { %911 = vmatprep.subr.bf16.mxu0 %v1378_v1 }
  0xa0   :  { %912 = vmatpush1.bf16.msra.mxu0 %v1376_v3 }
  0xa1   :  { %913 = vmatprep.subr.bf16.mxu0 %v1384_v4 }
  0xa4   :  { %914 = vmatpush1.bf16.msra.mxu0 %v1382_v5 }
  0xa7   :  { %916 = vmatmul.mubr.bf16.vlgmr.msra.gmra.mrb[0].mxu0 %v61_v7 }
 0x13c   :  { %v835_v15 = vpop.f32.mrb[0].mxu1 }
 0x13d   :  { %v837_v16 = vpop.f32.mrb[1].mxu1  ;;  %v836_v26 = vadd.f32 %v835_v15, %v190_v25 }
 0x13e   :  { %v838_v17 = vadd.f32 %v837_v16, %v194_v14  ;;  %v839_v18 = vpop.f32.mrb[2].mxu1 }
 0x13f   :  { %v840_v19 = vpop.f32.mrb[3].mxu1 }
 0x16c   :  { %v958_v20 = vpop.f32.mrb[4].mxu1 }
 0x16d   :  { %v960_v22 = vpop.f32.mrb[5].mxu1 }
 0x16e   :  { %v962_v23 = vpop.f32.mrb[6].mxu1 }
 0x16f   :  { %v963_v24 = vpop.f32.mrb[7].mxu1 }
 0x17a   :  { %v917_v27 = vpop.f32.mrb[0].mxu0 }
 0x17b   :  { %v1191_v28 = vadd.f32 %v917_v27, %v836_v26  ;;  %v919_v29 = vpop.f32.mrb[1].mxu0 }
 0x17c   :  { %v1194_v30 = vadd.f32 %v919_v29, %v838_v17  ;;  %v921_v31 = vpop.f32.mrb[2].mxu0 }
 0x17d   :  { %v1192_v32 = vadd.f32 %v1191_v28, %v958_v20  ;;  %v922_v33 = vpop.f32.mrb[3].mxu0 }
 0x17e   :  { %v1195_v34 = vadd.f32 %v1194_v30, %v960_v22 }
 0x17f   :  { %v965_v36 = vmax.f32 %v1192_v32, 0.0 }
 0x180   :  { %v966_v35 = vmax.f32 %v1195_v34, 0.0 }
 0x182   :  { %981 = vmatprep.subr.mxu1 %v966_v35 }
 0x183   :  { %982 = vmatpush1.xpose.msra.mxu1 %v965_v36 }
 0x186   :  { %1046 = vmatmul.mubr.f32.vlgmr.msra.gmra.mrb[8].mxu1 %v974_v37 }
 0x259   :  { %v1047_v39 = vpop.f32.mrb[8].mxu1 }
 0x25a   :  { %v1048_v40 = vadd.f32 %v1047_v39, %v969_v38  ;;  %v1049_v41 = vpop.f32.mrb[9].mxu1 }
 0x25c   :  { %1052 = vst.msk [vmem:[#allocation8] sm:$0x1] %vm1051_vm1, %v1048_v40 }
 0x25d   :  { %1440 = shalt.err (!%p1437_p6)
}
 0x25e   :  { %s1441_s4 = scalar_lea.hbm %s1549_s5, 16 }
 0x25f   :  { %p1442_p7 = scmp.ne.s32.totalorder %s1549_s5, %s1441_s4  ;;  %p1445_p8 = scmp.lt.u32.totalorder %s1441_s4, %s1549_s5 }
 0x261   :  { %p1447_p9 = pnand %p1445_p8, %p1442_p7 }
 0x263   :  { %1450 = shalt.err (!%p1447_p9)
}
 0x264   :  { %1062 = dma.vmem_to_hbm [thread:$0]  %s1060_s22, 16, %s1549_s5, [#allocation5]  }
 0x265   :  { %1455 = dma.done.wait [#allocation5], 16  }
 0x266   :  { %1456 = vsyncadd [#allocation5], 4294967280 }
 0x267   :  { %1066 = vsyncpa [#allocation4], 1 }
 0x268   :  { %1067 = vsyncpa [#allocation7], 1 }
 0x269   :  { %1068 = vsyncpa [#allocation5], 1 }

</bundles_post_ra>
